<compile_context>
chip_gen: v7x
topology: tpu7x:2x2x1
jax: 0.10.0
libtpu: 0.0.40
codegen_flags: <defaults>
</compile_context>

<pallas_src>
import jax
import jax.numpy as jnp
from jax import lax
from jax.experimental import pallas as pl
from jax.experimental.pallas import tpu as pltpu


# ----------------------------------------------------------------------------
# Fused kernel: 4 x Linear, 3 x LeakyReLU, Sigmoid — all in registers.
# ----------------------------------------------------------------------------
def _leaky_relu(v):
    return jnp.where(v > 0, v, 0.01 * v)  # nn.LeakyReLU default negative_slope


def _fcn_kernel(x_ref, w1_ref, b1_ref, w2_ref, b2_ref, w3_ref, b3_ref,
                w4_ref, b4_ref, o_ref):
    # x block: (TB, Din) row-major as stored in HBM.
    # All intermediates are feature-major (D, TB): batch on the lane axis.
    x = x_ref[...]
    # h1[d, b] = sum_k w1[d, k] * x[b, k]   (contract both minor dims: A @ B^T)
    h = _leaky_relu(
        lax.dot_general(w1_ref[...], x, (((1,), (1,)), ((), ())),
                        preferred_element_type=jnp.float32) + b1_ref[...])
    h = _leaky_relu(
        jnp.dot(w2_ref[...], h, preferred_element_type=jnp.float32) + b2_ref[...])
    h = _leaky_relu(
        jnp.dot(w3_ref[...], h, preferred_element_type=jnp.float32) + b3_ref[...])
    z = jnp.dot(w4_ref[...], h, preferred_element_type=jnp.float32) + b4_ref[...]
    # Sigmoid: exp (EUP) + approximate reciprocal (EUP) — frees the VPU slot.
    o_ref[...] = pl.reciprocal(1.0 + jnp.exp(-z), approx=True)


# ----------------------------------------------------------------------------
# Wrapper
# ----------------------------------------------------------------------------
def _round_up(n, m):
    return (n + m - 1) // m * m


def _pick_tile(B):
    # Small batch: one sublane-aligned block (grid of 1; perf irrelevant here).
    if B <= 256:
        return _round_up(B, 8)
    # Large batch: lane-dense tile (multiple of 128), up to 512 rows, but no
    # larger than half the rounded batch so v7x can shard the grid across
    # its two TensorCores.
    half = _round_up(B, 256) // 2
    return min(512, half)


def fcn_forward(x, params):
    """x: (B, in_size) float32 -> (B, 1) float32 in [0, 1]."""
    x = x.astype(jnp.float32)
    B, Din = x.shape
    D = params["w1"].shape[0]          # layer_size (weights stored (dout, din))

    TB = _pick_tile(B)
    G = pl.cdiv(B, TB)

    flops = 2 * B * (Din * D + 2 * D * D + D)
    nbytes = 4 * (B * Din + B + Din * D + 2 * D * D + 4 * D + 1)

    out = pl.pallas_call(
        _fcn_kernel,
        out_shape=jax.ShapeDtypeStruct((1, G * TB), jnp.float32),
        grid=(G,),
        in_specs=[
            pl.BlockSpec((TB, Din), lambda i: (i, 0)),   # batch-row tile (ragged last block OK)
            pl.BlockSpec((D, Din), lambda i: (0, 0)),    # weights pinned resident
            pl.BlockSpec((D, 1), lambda i: (0, 0)),
            pl.BlockSpec((D, D), lambda i: (0, 0)),
            pl.BlockSpec((D, 1), lambda i: (0, 0)),
            pl.BlockSpec((D, D), lambda i: (0, 0)),
            pl.BlockSpec((D, 1), lambda i: (0, 0)),
            pl.BlockSpec((1, D), lambda i: (0, 0)),
            pl.BlockSpec((1, 1), lambda i: (0, 0)),
        ],
        out_specs=pl.BlockSpec((1, TB), lambda i: (0, i)),   # lane-dense output slab
        compiler_params=pltpu.CompilerParams(
            dimension_semantics=("parallel",),               # shard batch tiles across TCs
        ),
        cost_estimate=pl.CostEstimate(
            flops=flops, transcendentals=2 * B, bytes_accessed=nbytes),
    )(x, params["w1"], params["b1"], params["w2"], params["b2"],
      params["w3"], params["b3"], params["w4"], params["b4"])

    return out[0, :B].reshape(B, 1)


# ----------------------------------------------------------------------------
# Parameters (deterministic synthetic init; PyTorch nn.Linear layout/init).
# Weights stored (dout, din), biases (dout, 1) — feature-major friendly.
# ----------------------------------------------------------------------------
def init_params(key, in_size, layer_size):
    ks = jax.random.split(key, 8)

    def lin(kw, kb, din, dout):
        bound = 1.0 / (float(din) ** 0.5)                 # PyTorch nn.Linear default
        w = jax.random.uniform(kw, (dout, din), jnp.float32, -bound, bound)
        b = jax.random.uniform(kb, (dout, 1), jnp.float32, -bound, bound)
        return w, b

    w1, b1 = lin(ks[0], ks[1], in_size, layer_size)
    w2, b2 = lin(ks[2], ks[3], layer_size, layer_size)
    w3, b3 = lin(ks[4], ks[5], layer_size, layer_size)
    w4, b4 = lin(ks[6], ks[7], layer_size, 1)
    return dict(w1=w1, b1=b1, w2=w2, b2=b2, w3=w3, b3=b3, w4=w4, b4=b4)


# ----------------------------------------------------------------------------
# Pure-JAX reference (correctness sanity check)
# ----------------------------------------------------------------------------
def _fcn_ref(x, p):
    h = _leaky_relu(x @ p["w1"].T + p["b1"].T)
    h = _leaky_relu(h @ p["w2"].T + p["b2"].T)
    h = _leaky_relu(h @ p["w3"].T + p["b3"].T)
    return jax.nn.sigmoid(h @ p["w4"].T + p["b4"].T)


if __name__ == "__main__":
    key = jax.random.PRNGKey(0)
    pkey, xkey = jax.random.split(key)

    in_size = 27 * 3        # pixelization='square' in the reference
    layer_size = 32
    batch = 8

    params = init_params(pkey, in_size, layer_size)
    x = jax.random.normal(xkey, (batch, in_size), jnp.float32)

    fwd = jax.jit(fcn_forward)
    out = fwd(x, params)
    jax.block_until_ready(out)

    ref = _fcn_ref(x, params)

    assert out.shape == (batch, 1)
    assert bool(jnp.all(jnp.isfinite(out)))
    # Approximate EUP reciprocal can land an ulp or two outside [0, 1].
    assert bool(jnp.all((out >= -1e-3) & (out <= 1.0 + 1e-3)))
    assert bool(jnp.allclose(out, ref, atol=2e-3, rtol=2e-3))
    print("KERNEL_OK")
</pallas_src>

<mosaic_0001>
module attributes {stable_mosaic.version = 11 : i64} {
  func.func @_fcn_kernel(%arg0: i32, %arg1: memref<8x81xf32, #tpu.memory_space<vmem>>, %arg2: memref<32x81xf32, #tpu.memory_space<vmem>>, %arg3: memref<32x1xf32, #tpu.memory_space<vmem>>, %arg4: memref<32x32xf32, #tpu.memory_space<vmem>>, %arg5: memref<32x1xf32, #tpu.memory_space<vmem>>, %arg6: memref<32x32xf32, #tpu.memory_space<vmem>>, %arg7: memref<32x1xf32, #tpu.memory_space<vmem>>, %arg8: memref<1x32xf32, #tpu.memory_space<vmem>>, %arg9: memref<1x1xf32, #tpu.memory_space<vmem>>, %arg10: memref<1x8xf32, #tpu.memory_space<vmem>>) attributes {dimension_semantics = [#tpu.dimension_semantics<parallel>], iteration_bounds = array<i64: 1>, scalar_prefetch = 0 : i64, scratch_operands = 0 : i64, tpu.core_type = #tpu.core_type<tc>, window_params = [{transform_indices = @transform_0, window_bounds = array<i64: 8, 81>}, {pipeline_mode = #tpu.pipeline_mode<synchronous>, transform_indices = @transform_1, window_bounds = array<i64: 32, 81>}, {pipeline_mode = #tpu.pipeline_mode<synchronous>, transform_indices = @transform_2, window_bounds = array<i64: 32, 1>}, {pipeline_mode = #tpu.pipeline_mode<synchronous>, transform_indices = @transform_3, window_bounds = array<i64: 32, 32>}, {pipeline_mode = #tpu.pipeline_mode<synchronous>, transform_indices = @transform_4, window_bounds = array<i64: 32, 1>}, {pipeline_mode = #tpu.pipeline_mode<synchronous>, transform_indices = @transform_5, window_bounds = array<i64: 32, 32>}, {pipeline_mode = #tpu.pipeline_mode<synchronous>, transform_indices = @transform_6, window_bounds = array<i64: 32, 1>}, {pipeline_mode = #tpu.pipeline_mode<synchronous>, transform_indices = @transform_7, window_bounds = array<i64: 1, 32>}, {pipeline_mode = #tpu.pipeline_mode<synchronous>, transform_indices = @transform_8, window_bounds = array<i64: 1, 1>}, {transform_indices = @transform_9, window_bounds = array<i64: 1, 8>}]} {
    %c0 = arith.constant 0 : index
    %c0_0 = arith.constant 0 : index
    %0 = vector.load %arg1[%c0, %c0_0] : memref<8x81xf32, #tpu.memory_space<vmem>>, vector<8x81xf32>
    %c0_1 = arith.constant 0 : index
    %c0_2 = arith.constant 0 : index
    %1 = vector.load %arg2[%c0_1, %c0_2] : memref<32x81xf32, #tpu.memory_space<vmem>>, vector<32x81xf32>
    %cst = arith.constant dense<0.000000e+00> : vector<32x8xf32>
    %2 = tpu.matmul %1, %0, %cst {dimension_numbers = #tpu.dot_dimension_numbers<[1], [1], [0], [0], [0, 0, 1, 0], [], []>} : vector<32x81xf32>, vector<8x81xf32>, vector<32x8xf32> -> vector<32x8xf32>
    %c0_3 = arith.constant 0 : index
    %c0_4 = arith.constant 0 : index
    %3 = vector.load %arg3[%c0_3, %c0_4] : memref<32x1xf32, #tpu.memory_space<vmem>>, vector<32x1xf32>
    %4 = vector.broadcast %3 : vector<32x1xf32> to vector<32x8xf32>
    %5 = arith.addf %2, %4 : vector<32x8xf32>
    %cst_5 = arith.constant 0.000000e+00 : f32
    %6 = vector.broadcast %cst_5 : f32 to vector<32x8xf32>
    %7 = arith.cmpf ogt, %5, %6 : vector<32x8xf32>
    %cst_6 = arith.constant 0.00999999977 : f32
    %8 = vector.broadcast %cst_6 : f32 to vector<32x8xf32>
    %9 = arith.mulf %8, %5 : vector<32x8xf32>
    %10 = arith.select %7, %5, %9 : vector<32x8xi1>, vector<32x8xf32>
    %c0_7 = arith.constant 0 : index
    %c0_8 = arith.constant 0 : index
    %11 = vector.load %arg4[%c0_7, %c0_8] : memref<32x32xf32, #tpu.memory_space<vmem>>, vector<32x32xf32>
    %cst_9 = arith.constant dense<0.000000e+00> : vector<32x8xf32>
    %12 = tpu.matmul %11, %10, %cst_9 {dimension_numbers = #tpu.dot_dimension_numbers<[1], [0], [0], [1], [0, 0, 1, 1], [], []>} : vector<32x32xf32>, vector<32x8xf32>, vector<32x8xf32> -> vector<32x8xf32>
    %c0_10 = arith.constant 0 : index
    %c0_11 = arith.constant 0 : index
    %13 = vector.load %arg5[%c0_10, %c0_11] : memref<32x1xf32, #tpu.memory_space<vmem>>, vector<32x1xf32>
    %14 = vector.broadcast %13 : vector<32x1xf32> to vector<32x8xf32>
    %15 = arith.addf %12, %14 : vector<32x8xf32>
    %cst_12 = arith.constant 0.000000e+00 : f32
    %16 = vector.broadcast %cst_12 : f32 to vector<32x8xf32>
    %17 = arith.cmpf ogt, %15, %16 : vector<32x8xf32>
    %cst_13 = arith.constant 0.00999999977 : f32
    %18 = vector.broadcast %cst_13 : f32 to vector<32x8xf32>
    %19 = arith.mulf %18, %15 : vector<32x8xf32>
    %20 = arith.select %17, %15, %19 : vector<32x8xi1>, vector<32x8xf32>
    %c0_14 = arith.constant 0 : index
    %c0_15 = arith.constant 0 : index
    %21 = vector.load %arg6[%c0_14, %c0_15] : memref<32x32xf32, #tpu.memory_space<vmem>>, vector<32x32xf32>
    %cst_16 = arith.constant dense<0.000000e+00> : vector<32x8xf32>
    %22 = tpu.matmul %21, %20, %cst_16 {dimension_numbers = #tpu.dot_dimension_numbers<[1], [0], [0], [1], [0, 0, 1, 1], [], []>} : vector<32x32xf32>, vector<32x8xf32>, vector<32x8xf32> -> vector<32x8xf32>
    %c0_17 = arith.constant 0 : index
    %c0_18 = arith.constant 0 : index
    %23 = vector.load %arg7[%c0_17, %c0_18] : memref<32x1xf32, #tpu.memory_space<vmem>>, vector<32x1xf32>
    %24 = vector.broadcast %23 : vector<32x1xf32> to vector<32x8xf32>
    %25 = arith.addf %22, %24 : vector<32x8xf32>
    %cst_19 = arith.constant 0.000000e+00 : f32
    %26 = vector.broadcast %cst_19 : f32 to vector<32x8xf32>
    %27 = arith.cmpf ogt, %25, %26 : vector<32x8xf32>
    %cst_20 = arith.constant 0.00999999977 : f32
    %28 = vector.broadcast %cst_20 : f32 to vector<32x8xf32>
    %29 = arith.mulf %28, %25 : vector<32x8xf32>
    %30 = arith.select %27, %25, %29 : vector<32x8xi1>, vector<32x8xf32>
    %c0_21 = arith.constant 0 : index
    %c0_22 = arith.constant 0 : index
    %31 = vector.load %arg8[%c0_21, %c0_22] : memref<1x32xf32, #tpu.memory_space<vmem>>, vector<1x32xf32>
    %cst_23 = arith.constant dense<0.000000e+00> : vector<1x8xf32>
    %32 = tpu.matmul %31, %30, %cst_23 {dimension_numbers = #tpu.dot_dimension_numbers<[1], [0], [0], [1], [0, 0, 1, 1], [], []>} : vector<1x32xf32>, vector<32x8xf32>, vector<1x8xf32> -> vector<1x8xf32>
    %c0_24 = arith.constant 0 : index
    %c0_25 = arith.constant 0 : index
    %33 = vector.load %arg9[%c0_24, %c0_25] : memref<1x1xf32, #tpu.memory_space<vmem>>, vector<1x1xf32>
    %34 = vector.broadcast %33 : vector<1x1xf32> to vector<1x8xf32>
    %35 = arith.addf %32, %34 : vector<1x8xf32>
    %cst_26 = arith.constant 0.000000e+00 : f32
    %36 = vector.broadcast %cst_26 : f32 to vector<1x8xf32>
    %37 = arith.subf %36, %35 : vector<1x8xf32>
    %38 = math.exp %37 : vector<1x8xf32>
    %cst_27 = arith.constant 1.000000e+00 : f32
    %39 = vector.broadcast %cst_27 : f32 to vector<1x8xf32>
    %40 = arith.addf %39, %38 : vector<1x8xf32>
    %41 = tpu.reciprocal %40 {approx = true} : vector<1x8xf32> -> vector<1x8xf32>
    %c0_28 = arith.constant 0 : index
    %c0_29 = arith.constant 0 : index
    %42 = vector.load %arg10[%c0_28, %c0_29] : memref<1x8xf32, #tpu.memory_space<vmem>>, vector<1x8xf32>
    tpu.vector_store %arg10[%c0_28, %c0_29], %41 {strides = array<i32>} : memref<1x8xf32, #tpu.memory_space<vmem>>, vector<1x8xf32>,
    return
  }
  func.func @transform_0(%arg0: i32) -> (i32, i32) {
    %c0_i32 = arith.constant 0 : i32
    %c0_i32_0 = arith.constant 0 : i32
    return %arg0, %c0_i32 : i32, i32
  }
  func.func @transform_1(%arg0: i32) -> (i32, i32) {
    %c0_i32 = arith.constant 0 : i32
    %c0_i32_0 = arith.constant 0 : i32
    %c0_i32_1 = arith.constant 0 : i32
    return %c0_i32, %c0_i32_0 : i32, i32
  }
  func.func @transform_2(%arg0: i32) -> (i32, i32) {
    %c0_i32 = arith.constant 0 : i32
    %c0_i32_0 = arith.constant 0 : i32
    %c0_i32_1 = arith.constant 0 : i32
    return %c0_i32, %c0_i32_0 : i32, i32
  }
  func.func @transform_3(%arg0: i32) -> (i32, i32) {
    %c0_i32 = arith.constant 0 : i32
    %c0_i32_0 = arith.constant 0 : i32
    %c0_i32_1 = arith.constant 0 : i32
    return %c0_i32, %c0_i32_0 : i32, i32
  }
  func.func @transform_4(%arg0: i32) -> (i32, i32) {
    %c0_i32 = arith.constant 0 : i32
    %c0_i32_0 = arith.constant 0 : i32
    %c0_i32_1 = arith.constant 0 : i32
    return %c0_i32, %c0_i32_0 : i32, i32
  }
  func.func @transform_5(%arg0: i32) -> (i32, i32) {
    %c0_i32 = arith.constant 0 : i32
    %c0_i32_0 = arith.constant 0 : i32
    %c0_i32_1 = arith.constant 0 : i32
    return %c0_i32, %c0_i32_0 : i32, i32
  }
  func.func @transform_6(%arg0: i32) -> (i32, i32) {
    %c0_i32 = arith.constant 0 : i32
    %c0_i32_0 = arith.constant 0 : i32
    %c0_i32_1 = arith.constant 0 : i32
    return %c0_i32, %c0_i32_0 : i32, i32
  }
  func.func @transform_7(%arg0: i32) -> (i32, i32) {
    %c0_i32 = arith.constant 0 : i32
    %c0_i32_0 = arith.constant 0 : i32
    %c0_i32_1 = arith.constant 0 : i32
    return %c0_i32, %c0_i32_0 : i32, i32
  }
  func.func @transform_8(%arg0: i32) -> (i32, i32) {
    %c0_i32 = arith.constant 0 : i32
    %c0_i32_0 = arith.constant 0 : i32
    %c0_i32_1 = arith.constant 0 : i32
    return %c0_i32, %c0_i32_0 : i32, i32
  }
  func.func @transform_9(%arg0: i32) -> (i32, i32) {
    %c0_i32 = arith.constant 0 : i32
    %c0_i32_0 = arith.constant 0 : i32
    return %c0_i32, %arg0 : i32, i32
  }
}

</mosaic_0001>

<bundles_post_ra>
// kernel: fcn_forward.1
= control target key start
LH: loop header
LB: loop body
LE: loop exit
PB: predicated region body
PF: predicated region fallthrough
CT: control target
= control target key end

     0   :  { %s912_s0 = inlined_call_operand.hbm [shape: f32[8,81], index: 0, kind: input, shape index: {}]   ;;  %s913_s1 = inlined_call_operand.vmem [shape: f32[32,81], index: 1, kind: input, shape index: {}]   ;;  %s914_s2 = inlined_call_operand.vmem [shape: f32[32,1], index: 2, kind: input, shape index: {}]   ;;  %s915_s3 = inlined_call_operand.vmem [shape: f32[32,32], index: 3, kind: input, shape index: {}]   ;;  %s916_s4 = inlined_call_operand.vmem [shape: f32[32,1], index: 4, kind: input, shape index: {}]   ;;  %s917_s5 = inlined_call_operand.vmem [shape: f32[32,32], index: 5, kind: input, shape index: {}]   ;;  %s918_s6 = inlined_call_operand.vmem [shape: f32[32,1], index: 6, kind: input, shape index: {}]   ;;  %s919_s7 = inlined_call_operand.vmem [shape: f32[1,32], index: 7, kind: input, shape index: {}]   ;;  %s920_s8 = inlined_call_operand.<no memory space> [shape: f32[1,1], index: 8, kind: input, shape index: {}]   ;;  %s921_s9 = inlined_call_operand.hbm [shape: f32[1,8], index: 9, kind: output, shape index: {}]  }
   0x1   :  { %v14_v0 = vstv %s920_s8 }
   0x2   :  { %15 = vst [vmem:[#allocation2] sm:$0x1] %v14_v0 }
   0x3   :  { %16 = vsyncpa [#allocation4], 0 }
   0x4   :  { %17 = vsyncpa [#allocation5], 0  ;;  %s739_s11 = smov [#allocation3]   ;;  %s691_s15 = scalar_lea.hbm %s912_s0, 128 }
   0x5   :  { %s24_s12 = sshll.u32 %s739_s11, 4  ;;  %p692_p0 = scmp.ne.s32.totalorder %s912_s0, %s691_s15  ;;  %s25_s12 = int_to_ptr.vmem [resolvable:$true] %s24_s12 }
   0x6   :  { %p695_p1 = scmp.lt.u32.totalorder %s691_s15, %s912_s0 }
   0x8   :  { %p697_p2 = pnand %p695_p1, %p692_p0 }
   0xa   :  { %700 = shalt.err (!%p697_p2)
}
   0xb   :  { %s701_s8 = scalar_lea.vmem %s25_s12, 128  ;;  %p706_p4 = scmp.lt.s32.totalorder %s25_s12, %s25_s12 }
   0xc   :  { %p702_p3 = scmp.ne.s32.totalorder %s25_s12, %s701_s8  ;;  %p707_p5 = scmp.lt.s32.totalorder %s701_s8, %s701_s8 }
   0xe   :  { %p708_p6 = por %p707_p5, %p706_p4 }
  0x10   :  { %p709_p7 = pnand %p708_p6, %p702_p3 }
  0x12   :  { %712 = shalt.err (!%p709_p7)
}
  0x13   :  { %27 = dma.hbm_to_vmem [thread:$0]  %s912_s0, 128, %s25_s12, [#allocation4]  }
  0x14   :  { %735 = dma.done.wait [#allocation4], 128  }
  0x15   :  { %736 = vsyncadd [#allocation4], 4294967168  ;;  %v740_v1 = vmov 0   ;;  %vm76_vm0 = vcmask 662528   ;;  %v47_v2 = vld [vmem:[#allocation3] sm:$0xff]  ;;  %v54_v6 = vld [vmem:[%s914_s2 + $0x10] sm:$0xff] }
  0x16   :  { %685 = vset.pattern.permute.xlu0 %v740_v1  ;;  %686 = vset.pattern.permute.xlu1 %v740_v1  ;;  %v48_v3 = vld [vmem:[%s913_s1] sm:$0xff]  ;;  %v49_v5 = vld [vmem:[%s913_s1 + $0x8] sm:$0xff]  ;;  %v50_v7 = vld [vmem:[%s913_s1 + $0x10] sm:$0xff]  ;;  %vm217_vm1 = vcmask 261120   ;;  %vm742_vm10 = vmmov 0   ;;  %s744_s8 = smov [#allocation6]  }
  0x17   :  { %610 = vmatprep.subr.msk.mxu0 %vm76_vm0, %v47_v2  ;;  %612 = vmatprep.mubr.msk.f32.mxu0 %vm76_vm0, %v48_v3  ;;  %v52_v4 = vld [vmem:[%s914_s2] sm:$0xff]  ;;  %v53_v8 = vld [vmem:[%s914_s2 + $0x8] sm:$0xff]  ;;  %v55_v9 = vld [vmem:[%s914_s2 + $0x18] sm:$0xff]  ;;  %s561_s20 = sshll.u32 %s744_s8, 4  ;;  %vm553_vm15 = vcmask 57344   ;;  %s562_s20 = int_to_ptr.vmem [resolvable:$true] %s561_s20 }
  0x18   :  { %611 = vmatpush3.xpose.msk.msra.mxu0 %vm76_vm0, %v47_v2  ;;  %58 = vperm.xlu0 %685, %v52_v4   ;;  %v51_v10 = vld [vmem:[%s913_s1 + $0x18] sm:$0xff]  ;;  %v193_v11 = vld [vmem:[%s916_s4] sm:$0xff]  ;;  %v194_v12 = vld [vmem:[%s916_s4 + $0x8] sm:$0xff]  ;;  %s717_s1 = scalar_lea.vmem %s562_s20, 32  ;;  %p718_p9 = scmp.lt.s32.totalorder %s562_s20, %s562_s20 }
  0x19   :  { %68 = vperm.xlu1 %686, %v54_v6   ;;  %v195_v13 = vld [vmem:[%s916_s4 + $0x10] sm:$0xff]  ;;  %v196_v14 = vld [vmem:[%s916_s4 + $0x18] sm:$0xff]  ;;  %v331_v15 = vld [vmem:[%s918_s6] sm:$0xff] }
  0x1a   :  { %v332_v16 = vld [vmem:[%s918_s6 + $0x8] sm:$0xff]  ;;  %v333_v17 = vld [vmem:[%s918_s6 + $0x10] sm:$0xff]  ;;  %v334_v18 = vld [vmem:[%s918_s6 + $0x18] sm:$0xff] }
  0x1b   :  { %613 = vmatmul.mubr.msk.f32.vlgmr.msra.gmra.mrb[0].mxu0 %vm76_vm0, %v49_v5  ;;  %v465_v19 = vld [vmem:[#allocation2] sm:$0x1]  ;;  %v190_v43 = vld [vmem:[%s915_s3 + $0x8] sm:$0xff]  ;;  %v191_v44 = vld [vmem:[%s915_s3 + $0x10] sm:$0xff] }
  0x1c   :  { %615 = vmatprep.mubr.msk.f32.mxu0 %vm76_vm0, %v50_v7  ;;  %63 = vperm.xlu0 %685, %v53_v8   ;;  %v189_v20 = vld [vmem:[%s915_s3] sm:$0xff]  ;;  %v192_v45 = vld [vmem:[%s915_s3 + $0x18] sm:$0xff]  ;;  %v328_v5 = vld [vmem:[%s917_s5 + $0x8] sm:$0xff]  ;;  %v741_v8 = vmov 0.0|0.0  }
  0x1d   :  { %73 = vperm.xlu1 %686, %v55_v9   ;;  %626 = vmatprep.mubr.msk.f32.mxu1 %vm217_vm1, %v189_v20  ;;  %v327_v46 = vld [vmem:[%s917_s5] sm:$0xff]  ;;  %v329_v6 = vld [vmem:[%s917_s5 + $0x10] sm:$0xff]  ;;  %v330_v7 = vld [vmem:[%s917_s5 + $0x18] sm:$0xff]  ;;  %v743_v9 = vmov 0.0  }
  0x1f   :  { %616 = vmatmul.mubr.msk.f32.gmra.mrb[2].mxu0 %vm76_vm0, %v51_v10 }
  0x20   :  { %199 = vperm.xlu0 %685, %v193_v11   ;;  %640 = vmatprep.mubr.msk.f32.mxu0 %vm217_vm1, %v327_v46 }
  0x21   :  { %204 = vperm.xlu1 %686, %v194_v12  }
  0x24   :  { %209 = vperm.xlu0 %685, %v195_v13  }
  0x25   :  { %214 = vperm.xlu1 %686, %v196_v14  }
  0x28   :  { %337 = vperm.xlu0 %685, %v331_v15  }
  0x29   :  { %342 = vperm.xlu1 %686, %v332_v16  }
  0x2c   :  { %347 = vperm.xlu0 %685, %v333_v17  }
  0x2d   :  { %352 = vperm.xlu1 %686, %v334_v18  }
  0x30   :  { %468 = vperm.xlu0 %685, %v465_v19  }
  0x97   :  { %v59_v21 = vpop.permute.xlu0 %58 }
  0x98   :  { %v69_v22 = vpop.permute.xlu1 %68 }
  0x9b   :  { %v64_v23 = vpop.permute.xlu0 %63 }
  0x9c   :  { %v74_v29 = vpop.permute.xlu1 %73 }
  0x9f   :  { %v200_v48 = vpop.permute.xlu0 %199 }
  0xa0   :  { %v205_v47 = vpop.permute.xlu1 %204 }
  0xa3   :  { %v210_v57 = vpop.permute.xlu0 %209 }
  0xa4   :  { %v215_v54 = vpop.permute.xlu1 %214 }
  0xa7   :  { %v338_v11 = vpop.permute.xlu0 %337 }
  0xa8   :  { %v343_v10 = vpop.permute.xlu1 %342 }
  0xab   :  { %v348_v20 = vpop.permute.xlu0 %347 }
  0xac   :  { %v353_v17 = vpop.permute.xlu1 %352 }
  0xee   :  { %v614_v24 = vpop.f32.mrb[0].mxu0 }
  0xef   :  { %v164_v25 = vadd.f32 %v614_v24, %v64_v23  ;;  %v158_v26 = vpop.f32.mrb[1].mxu0 }
  0xf0   :  { %v159_v27 = vadd.f32 %v158_v26, %v59_v21 }
  0xf1   :  { %v182_v28 = vmul.f32 0.01, %v164_v25  ;;  %vm178_vm2 = vcmp.gt.f32.partialorder %v164_v25, 0.0 }
  0xf2   :  { %v181_v30 = vmul.f32 0.01, %v159_v27  ;;  %v617_v31 = vpop.f32.mrb[2].mxu0  ;;  %vm177_vm3 = vcmp.gt.f32.partialorder %v159_v27, 0.0 }
  0xf3   :  { %v174_v32 = vadd.f32 %v617_v31, %v74_v29  ;;  %v168_v33 = vpop.f32.mrb[3].mxu0  ;;  %v186_v34 = vsel %vm178_vm2, %v164_v25, %v182_v28 }
  0xf4   :  { %v169_v35 = vadd.f32 %v168_v33, %v69_v22  ;;  %v185_v36 = vsel %vm177_vm3, %v159_v27, %v181_v30  ;;  %v471_v33 = vlaneseq }
  0xf5   :  { %vm180_vm4 = vcmp.gt.f32.partialorder %v174_v32, 0.0  ;;  %v184_v37 = vmul.f32 0.01, %v174_v32  ;;  %v657_v38 = vpack.c.bf16 %v186_v34, %v185_v36  ;;  %v469_v36 = vpop.permute.xlu0 %468 }
  0xf6   :  { %vm179_vm5 = vcmp.gt.f32.partialorder %v169_v35, 0.0  ;;  %v183_v39 = vmul.f32 0.01, %v169_v35  ;;  %v472_v34 = vshrl.u32 %v471_v33, 7 }
  0xf7   :  { %658 = vmatprep.subr.bf16.mxu1 %v657_v38  ;;  %v188_v40 = vsel %vm180_vm4, %v174_v32, %v184_v37  ;;  %v464_v32 = vld [vmem:[%s919_s7] sm:$0x1]  ;;  %s713_s7 = scalar_lea.vmem %s562_s20, 16 }
  0xf8   :  { %660 = vmatpush3.bf16.msra.mxu1 %v657_v38  ;;  %v187_v41 = vsel %vm179_vm5, %v169_v35, %v183_v39  ;;  %v473_v35 = vsub.s32 0, %v472_v34  ;;  %p714_p8 = scmp.ne.s32.totalorder %s562_s20, %s713_s7  ;;  %p719_p10 = scmp.lt.s32.totalorder %s717_s1, %s713_s7 }
  0xf9   :  { %v661_v42 = vpack.c.bf16 %v188_v40, %v187_v41 }
  0xfa   :  { %v474_v37 = vrot.slane %v469_v36, %v473_v35  ;;  %p720_p11 = por %p719_p10, %p718_p9 }
  0xfb   :  { %662 = vmatprep.subr.bf16.mxu1 %v661_v42 }
  0xfc   :  { %664 = vmatpush3.bf16.msra.mxu1 %v661_v42  ;;  %p721_p12 = pnand %p720_p11, %p714_p8 }
  0xfd   :  { %673 = vmatprep.subr.bf16.mxu1 %v741_v8 }
  0xff   :  { %627 = vmatmul.mubr.msk.f32.vlgmr.msra.gmra.mrb[0].mxu1 %vm217_vm1, %v190_v43 }
 0x100   :  { %629 = vmatprep.mubr.msk.f32.mxu1 %vm217_vm1, %v191_v44 }
 0x103   :  { %630 = vmatmul.mubr.msk.f32.gmra.mrb[2].mxu1 %vm217_vm1, %v192_v45 }
 0x104   :  { %654 = vmatprep.mubr.msk.f32.mxu1 %vm742_vm10, %v743_v9 }
 0x1d2   :  { %v628_v49 = vpop.f32.mrb[0].mxu1 }
 0x1d3   :  { %v302_v50 = vadd.f32 %v628_v49, %v205_v47  ;;  %v296_v51 = vpop.f32.mrb[1].mxu1 }
 0x1d4   :  { %v297_v52 = vadd.f32 %v296_v51, %v200_v48 }
 0x1d5   :  { %vm316_vm6 = vcmp.gt.f32.partialorder %v302_v50, 0.0  ;;  %v320_v53 = vmul.f32 0.01, %v302_v50 }
 0x1d6   :  { %vm315_vm7 = vcmp.gt.f32.partialorder %v297_v52, 0.0  ;;  %v319_v55 = vmul.f32 0.01, %v297_v52  ;;  %v631_v56 = vpop.f32.mrb[2].mxu1 }
 0x1d7   :  { %v312_v58 = vadd.f32 %v631_v56, %v215_v54  ;;  %v306_v59 = vpop.f32.mrb[3].mxu1  ;;  %v324_v60 = vsel %vm316_vm6, %v302_v50, %v320_v53 }
 0x1d8   :  { %v307_v61 = vadd.f32 %v306_v59, %v210_v57  ;;  %v323_v62 = vsel %vm315_vm7, %v297_v52, %v319_v55 }
 0x1d9   :  { %vm318_vm8 = vcmp.gt.f32.partialorder %v312_v58, 0.0  ;;  %v322_v63 = vmul.f32 0.01, %v312_v58  ;;  %v665_v0 = vpack.c.bf16 %v324_v60, %v323_v62 }
 0x1da   :  { %vm317_vm9 = vcmp.gt.f32.partialorder %v307_v61, 0.0  ;;  %v321_v1 = vmul.f32 0.01, %v307_v61 }
 0x1db   :  { %666 = vmatprep.subr.bf16.mxu0 %v665_v0  ;;  %v326_v2 = vsel %vm318_vm8, %v312_v58, %v322_v63 }
 0x1dc   :  { %668 = vmatpush3.bf16.msra.mxu0 %v665_v0  ;;  %v325_v3 = vsel %vm317_vm9, %v307_v61, %v321_v1 }
 0x1dd   :  { %v669_v4 = vpack.c.bf16 %v326_v2, %v325_v3 }
 0x1df   :  { %670 = vmatprep.subr.bf16.mxu0 %v669_v4 }
 0x1e0   :  { %672 = vmatpush3.bf16.msra.mxu0 %v669_v4 }
 0x1e3   :  { %641 = vmatmul.mubr.msk.f32.vlgmr.msra.gmra.mrb[4].mxu0 %vm217_vm1, %v328_v5 }
 0x1e4   :  { %643 = vmatprep.mubr.msk.f32.mxu0 %vm217_vm1, %v329_v6 }
 0x1e7   :  { %644 = vmatmul.mubr.msk.f32.gmra.mrb[6].mxu0 %vm217_vm1, %v330_v7 }
 0x2b6   :  { %v642_v12 = vpop.f32.mrb[4].mxu0 }
 0x2b7   :  { %v439_v13 = vadd.f32 %v642_v12, %v343_v10  ;;  %v433_v14 = vpop.f32.mrb[5].mxu0 }
 0x2b8   :  { %v434_v15 = vadd.f32 %v433_v14, %v338_v11 }
 0x2b9   :  { %vm453_vm11 = vcmp.gt.f32.partialorder %v439_v13, 0.0  ;;  %v457_v16 = vmul.f32 0.01, %v439_v13 }
 0x2ba   :  { %vm452_vm12 = vcmp.gt.f32.partialorder %v434_v15, 0.0  ;;  %v456_v18 = vmul.f32 0.01, %v434_v15  ;;  %v645_v19 = vpop.f32.mrb[6].mxu0 }
 0x2bb   :  { %v461_v21 = vsel %vm453_vm11, %v439_v13, %v457_v16  ;;  %v449_v22 = vadd.f32 %v645_v19, %v353_v17  ;;  %v443_v23 = vpop.f32.mrb[7].mxu0 }
 0x2bc   :  { %v460_v24 = vsel %vm452_vm12, %v434_v15, %v456_v18  ;;  %v444_v25 = vadd.f32 %v443_v23, %v348_v20 }
 0x2bd   :  { %v674_v26 = vpack.c.bf16 %v461_v21, %v460_v24  ;;  %vm455_vm13 = vcmp.gt.f32.partialorder %v449_v22, 0.0  ;;  %v459_v27 = vmul.f32 0.01, %v449_v22 }
 0x2be   :  { %vm454_vm14 = vcmp.gt.f32.partialorder %v444_v25, 0.0  ;;  %v458_v28 = vmul.f32 0.01, %v444_v25 }
 0x2bf   :  { %v463_v29 = vsel %vm455_vm13, %v449_v22, %v459_v27  ;;  %675 = vmatpush3.bf16.msra.mxu1 %v674_v26 }
 0x2c0   :  { %v462_v30 = vsel %vm454_vm14, %v444_v25, %v458_v28  ;;  %676 = vmatprep.subr.bf16.mxu1 %v741_v8 }
 0x2c1   :  { %v677_v31 = vpack.c.bf16 %v463_v29, %v462_v30 }
 0x2c3   :  { %678 = vmatpush3.bf16.msra.mxu1 %v677_v31 }
 0x2c6   :  { %655 = vmatmul.mubr.msk.f32.vlgmr.msra.gmra.mrb[4].mxu1 %vm217_vm1, %v464_v32 }
 0x399   :  { %v544_v38 = vpop.f32.mrb[4].mxu1 }
 0x39a   :  { %v545_v39 = vadd.f32 %v544_v38, %v474_v37  ;;  %v656_v40 = vpop.f32.mrb[5].mxu1 }
 0x39c   :  { %v548_v41 = vsub.f32 0.0, %v545_v39 }
 0x39e   :  { %v549_v42 = vmul.f32 1.442695, %v548_v41 }
 0x3a0   :  { %687 = vpow2.f32 %v549_v42 }
 0x3aa   :  { %v688_v43 = vpop.eup %687 }
 0x3ab   :  { %v551_v44 = vadd.f32 1.0, %v688_v43 }
 0x3ad   :  { %689 = vrcp.f32 %v551_v44 }
 0x3b7   :  { %v690_v45 = vpop.eup %689 }
 0x3b8   :  { %554 = vst.msk [vmem:[#allocation6] sm:$0x1] %vm553_vm15, %v690_v45 }
 0x3b9   :  { %724 = shalt.err (!%p721_p12)
}
 0x3ba   :  { %s725_s23 = scalar_lea.hbm %s921_s9, 16 }
 0x3bb   :  { %p726_p13 = scmp.ne.s32.totalorder %s921_s9, %s725_s23  ;;  %p729_p0 = scmp.lt.u32.totalorder %s725_s23, %s921_s9 }
 0x3bd   :  { %p731_p1 = pnand %p729_p0, %p726_p13 }
 0x3bf   :  { %734 = shalt.err (!%p731_p1)
}
 0x3c0   :  { %564 = dma.vmem_to_hbm [thread:$0]  %s562_s20, 16, %s921_s9, [#allocation5]  }
 0x3c1   :  { %737 = dma.done.wait [#allocation5], 16  }
 0x3c2   :  { %738 = vsyncadd [#allocation5], 4294967280 }
 0x3c3   :  { %568 = vsyncpa [#allocation4], 1 }
 0x3c4   :  { %569 = vsyncpa [#allocation5], 1 }

</bundles_post_ra>
